<compile_context>
chip_gen: v7x
topology: tpu7x:2x2x1
jax: 0.10.0
libtpu: 0.0.40
codegen_flags: <defaults>
</compile_context>

<pallas_src>
import functools

import jax
import jax.numpy as jnp
from jax.experimental import pallas as pl
from jax.experimental.pallas import tpu as pltpu


def _pick_row_tile(rows, emb, itemsize, vmem_budget_bytes=8 * 1024 * 1024):
    """Largest row tile that (a) divides `rows`, (b) is a multiple of the
    sublane packing for this dtype, and (c) keeps the double-buffered
    per-step footprint (2 bufs x (in + out)) roughly <= vmem_budget_bytes."""
    sub = 8 if itemsize >= 4 else (16 if itemsize == 2 else 32)
    if rows < sub or rows % sub != 0:
        # Whole-array block: block dims equal to the full array dims are allowed.
        return rows
    cap = vmem_budget_bytes // (4 * emb * itemsize)   # 2 buffers each for x and out
    cap = max(sub, min(cap, 2048, rows))
    cap -= cap % sub
    for tb in range(cap, sub - 1, -sub):
        if rows % tb == 0:
            return tb
    return rows


def modality_type_emb_kernel(mask_ref, x_ref, table_ref, out_ref, *, n_tokens, block_rows):
    """One row block.

    mask_ref  : SMEM (2,) int32        -- (len_modality_1, len_modality_0)
    x_ref     : VMEM (block_rows, E)   -- rows are flattened (batch, token) pairs
    table_ref : VMEM (2, E)            -- nn.Embedding(2, E) weight
    out_ref   : VMEM (block_rows, E)
    """
    # Global row index of each local row; token index within its sequence.
    row_start = pl.program_id(0) * block_rows
    local = jax.lax.broadcasted_iota(jnp.int32, (block_rows, 1), 0)
    token = (row_start + local) % n_tokens                   # (block_rows, 1)
    is_type1 = token < mask_ref[0]                           # (block_rows, 1)

    emb1 = table_ref[pl.ds(1, 1), :]                         # (1, E)
    emb0 = table_ref[pl.ds(0, 1), :]                         # (1, E)
    add = jnp.where(is_type1, emb1, emb0)                    # (block_rows, E) by broadcast
    out_ref[...] = x_ref[...] + add


def modality_type_embedding_forward(x, type_table, mask):
    """x: (B, N, E) float; type_table: (2, E) Embedding weight; mask: (2,) int."""
    B, N, E = x.shape
    rows = B * N
    x2 = x.reshape(rows, E)                                  # E stays lane-dense
    table = type_table.astype(x.dtype)
    mask = mask.astype(jnp.int32)

    tb = _pick_row_tile(rows, E, jnp.dtype(x.dtype).itemsize)
    grid = (rows // tb,)

    kernel = functools.partial(modality_type_emb_kernel, n_tokens=N, block_rows=tb)

    out = pl.pallas_call(
        kernel,
        out_shape=jax.ShapeDtypeStruct((rows, E), x.dtype),
        grid_spec=pltpu.PrefetchScalarGridSpec(
            num_scalar_prefetch=1,                           # mask -> SMEM
            grid=grid,
            in_specs=[
                pl.BlockSpec((tb, E), lambda i, mask_ref: (i, 0)),   # x row block
                pl.BlockSpec((2, E), lambda i, mask_ref: (0, 0)),    # embedding table
            ],
            out_specs=pl.BlockSpec((tb, E), lambda i, mask_ref: (i, 0)),
        ),
        compiler_params=pltpu.CompilerParams(
            dimension_semantics=("parallel",),               # shard row blocks across TCs (v7x)
            vmem_limit_bytes=32 * 1024 * 1024,               # headroom over v5e's 16 MiB default
        ),
        input_output_aliases={1: 0},                         # x2 -> out: in-place add in HBM
    )(mask, x2, table)

    return out.reshape(B, N, E)


def modality_type_embedding_reference(x, type_table, mask):
    """Pure-JAX reference mirroring the PyTorch forward."""
    B, N, E = x.shape
    type_idx = jnp.where(jnp.arange(N) < mask[0], 1, 0)      # 1 for first modality, else 0
    type_emb = type_table[type_idx]                          # (N, E)
    return x + type_emb[None, :, :]


if __name__ == "__main__":
    # Small shapes consistent with the module.
    B, emb_size = 2, 32
    mask0, mask1 = 5, 3                    # lengths of the two modalities
    N = mask0 + mask1                      # x's sequence dim must equal mask0 + mask1

    key0 = jax.random.PRNGKey(0)
    k_x, k_w = jax.random.split(key0, 2)

    x = jax.random.normal(k_x, (B, N, emb_size), dtype=jnp.float32)
    # Deterministic "init" of nn.Embedding(2, emb_size).weight
    type_table = 0.1 * jax.random.normal(k_w, (2, emb_size), dtype=jnp.float32)
    mask = jnp.array([mask0, mask1], dtype=jnp.int32)

    out = modality_type_embedding_forward(x, type_table, mask)
    out = jax.block_until_ready(out)

    ref = modality_type_embedding_reference(x, type_table, mask)
    assert out.shape == (B, N, emb_size)
    assert jnp.allclose(out, ref, atol=1e-6, rtol=1e-6), \
        f"max abs diff = {jnp.max(jnp.abs(out - ref))}"

    print("KERNEL_OK")
</pallas_src>

<mosaic_0001>
module attributes {stable_mosaic.version = 11 : i64} {
  func.func @modality_type_emb_kernel(%arg0: i32, %arg1: memref<2xi32, #tpu.memory_space<smem>>, %arg2: memref<16x32xf32, #tpu.memory_space<vmem>>, %arg3: memref<2x32xf32, #tpu.memory_space<vmem>>, %arg4: memref<16x32xf32, #tpu.memory_space<vmem>>) attributes {dimension_semantics = [#tpu.dimension_semantics<parallel>], iteration_bounds = array<i64: 1>, scalar_prefetch = 1 : i64, scratch_operands = 0 : i64, tpu.core_type = #tpu.core_type<tc>, window_params = [{transform_indices = @transform_0, window_bounds = array<i64: 16, 32>}, {pipeline_mode = #tpu.pipeline_mode<synchronous>, transform_indices = @transform_1, window_bounds = array<i64: 2, 32>}, {transform_indices = @transform_2, window_bounds = array<i64: 16, 32>}]} {
    %c16_i32 = arith.constant 16 : i32
    %0 = arith.muli %arg0, %c16_i32 : i32
    %1 = tpu.iota {dimensions = array<i32: 0>} : vector<16x1xi32>
    %2 = vector.broadcast %0 : i32 to vector<16x1xi32>
    %3 = arith.addi %2, %1 : vector<16x1xi32>
    %c8_i32 = arith.constant 8 : i32
    %c0_i32 = arith.constant 0 : i32
    %4 = arith.cmpi eq, %c8_i32, %c0_i32 : i32
    %c1_i32 = arith.constant 1 : i32
    %5 = arith.select %4, %c1_i32, %c8_i32 : i32
    %6 = vector.broadcast %5 : i32 to vector<16x1xi32>
    %7 = arith.remsi %3, %6 : vector<16x1xi32>
    %c0_i32_0 = arith.constant 0 : i32
    %8 = vector.broadcast %c0_i32_0 : i32 to vector<16x1xi32>
    %9 = arith.cmpi ne, %7, %8 : vector<16x1xi32>
    %c0_i32_1 = arith.constant 0 : i32
    %10 = vector.broadcast %c0_i32_1 : i32 to vector<16x1xi32>
    %11 = arith.cmpi slt, %7, %10 : vector<16x1xi32>
    %c0_i32_2 = arith.constant 0 : i32
    %12 = arith.cmpi slt, %5, %c0_i32_2 : i32
    %13 = vector.broadcast %12 : i1 to vector<16x1xi1>
    %14 = vector.broadcast %13 : vector<16x1xi1> to vector<16x1xi1>
    %15 = arith.xori %11, %14 : vector<16x1xi1>
    %16 = arith.andi %15, %9 : vector<16x1xi1>
    %17 = vector.broadcast %5 : i32 to vector<16x1xi32>
    %18 = arith.addi %7, %17 : vector<16x1xi32>
    %19 = arith.select %16, %18, %7 : vector<16x1xi1>, vector<16x1xi32>
    %c0 = arith.constant 0 : index
    %20 = memref.load %arg1[%c0] : memref<2xi32, #tpu.memory_space<smem>>
    %21 = vector.broadcast %20 : i32 to vector<16x1xi32>
    %22 = arith.cmpi slt, %19, %21 : vector<16x1xi32>
    %c1 = arith.constant 1 : index
    %c0_3 = arith.constant 0 : index
    %23 = vector.load %arg3[%c1, %c0_3] : memref<2x32xf32, #tpu.memory_space<vmem>>, vector<1x32xf32>
    %c0_4 = arith.constant 0 : index
    %c0_5 = arith.constant 0 : index
    %24 = vector.load %arg3[%c0_4, %c0_5] : memref<2x32xf32, #tpu.memory_space<vmem>>, vector<1x32xf32>
    %25 = vector.shape_cast %22 : vector<16x1xi1> to vector<16x1xi1>
    %26 = vector.broadcast %25 : vector<16x1xi1> to vector<16x32xi1>
    %27 = vector.shape_cast %23 : vector<1x32xf32> to vector<1x32xf32>
    %28 = vector.broadcast %27 : vector<1x32xf32> to vector<16x32xf32>
    %29 = vector.shape_cast %24 : vector<1x32xf32> to vector<1x32xf32>
    %30 = vector.broadcast %29 : vector<1x32xf32> to vector<16x32xf32>
    %31 = arith.select %26, %28, %30 : vector<16x32xi1>, vector<16x32xf32>
    %c0_6 = arith.constant 0 : index
    %c0_7 = arith.constant 0 : index
    %32 = vector.load %arg2[%c0_6, %c0_7] : memref<16x32xf32, #tpu.memory_space<vmem>>, vector<16x32xf32>
    %33 = arith.addf %32, %31 : vector<16x32xf32>
    %c0_8 = arith.constant 0 : index
    %c0_9 = arith.constant 0 : index
    %34 = vector.load %arg4[%c0_8, %c0_9] : memref<16x32xf32, #tpu.memory_space<vmem>>, vector<16x32xf32>
    tpu.vector_store %arg4[%c0_8, %c0_9], %33 {strides = array<i32>} : memref<16x32xf32, #tpu.memory_space<vmem>>, vector<16x32xf32>,
    return
  }
  func.func @transform_0(%arg0: i32, %arg1: memref<2xi32, #tpu.memory_space<smem>>) -> (i32, i32) {
    %c0_i32 = arith.constant 0 : i32
    %c0_i32_0 = arith.constant 0 : i32
    return %arg0, %c0_i32 : i32, i32
  }
  func.func @transform_1(%arg0: i32, %arg1: memref<2xi32, #tpu.memory_space<smem>>) -> (i32, i32) {
    %c0_i32 = arith.constant 0 : i32
    %c0_i32_0 = arith.constant 0 : i32
    %c0_i32_1 = arith.constant 0 : i32
    return %c0_i32, %c0_i32_0 : i32, i32
  }
  func.func @transform_2(%arg0: i32, %arg1: memref<2xi32, #tpu.memory_space<smem>>) -> (i32, i32) {
    %c0_i32 = arith.constant 0 : i32
    %c0_i32_0 = arith.constant 0 : i32
    return %arg0, %c0_i32 : i32, i32
  }
}

</mosaic_0001>

<bundles_post_ra>
// kernel: tpu_custom_call.1
= control target key start
LH: loop header
LB: loop body
LE: loop exit
PB: predicated region body
PF: predicated region fallthrough
CT: control target
= control target key end

     0   :  { %s241_s0 = inlined_call_operand.vmem [shape: s32[2], index: 0, kind: input, shape index: {}]   ;;  %s242_s1 = inlined_call_operand.hbm [shape: f32[16,32], index: 1, kind: input, shape index: {}, may-alias: {1,3}]   ;;  %s243_s2 = inlined_call_operand.vmem [shape: f32[2,32], index: 2, kind: input, shape index: {}]   ;;  %s244_s3 = inlined_call_operand.hbm [shape: f32[16,32], index: 3, kind: output, shape index: {}, may-alias: {1,3}]  }
   0x1   :  { %s8_s14 = sshll.u32 %s241_s0, 4  ;;  %s9_s14 = int_to_ptr.vmem [resolvable:$true] %s8_s14 }
   0x2   :  { %s115_s15 = scalar_lea.vmem %s9_s14, 16  ;;  %p120_p1 = scmp.lt.s32.totalorder %s9_s14, %s9_s14 }
   0x3   :  { %p116_p0 = scmp.ne.s32.totalorder %s9_s14, %s115_s15  ;;  %p121_p2 = scmp.lt.s32.totalorder %s115_s15, %s115_s15 }
   0x5   :  { %p122_p3 = por %p121_p2, %p120_p1 }
   0x7   :  { %p123_p4 = pnand %p122_p3, %p116_p0 }
   0x9   :  { %126 = shalt.err (!%p123_p4)  }
   0xa   :  { %s177_s16 = smov [#allocation3]  }
   0xb   :  { %11 = dma.vmem_to_smem %s9_s14, 16, %s177_s16, [#allocation2] }
   0xc   :  { %171 = dma.done.wait [#allocation2], 16 }
   0xd   :  { %172 = vsyncadd [#allocation2], 4294967280 }
   0xe   :  { %13 = sfence }
   0xf   :  { %14 = vsyncpa [#allocation5], 0 }
  0x10   :  { %15 = vsyncpa [#allocation6], 0  ;;  %s178_s17 = smov [#allocation4]   ;;  %s127_s20 = scalar_lea.hbm %s242_s1, 256 }
  0x11   :  { %s21_s18 = sshll.u32 %s178_s17, 4  ;;  %p128_p5 = scmp.ne.s32.totalorder %s242_s1, %s127_s20  ;;  %s22_s18 = int_to_ptr.vmem [resolvable:$true] %s21_s18 }
  0x12   :  { %p131_p6 = scmp.lt.u32.totalorder %s127_s20, %s242_s1 }
  0x14   :  { %p133_p7 = pnand %p131_p6, %p128_p5 }
  0x16   :  { %136 = shalt.err (!%p133_p7)
}
  0x17   :  { %s137_s25 = scalar_lea.vmem %s22_s18, 256  ;;  %p142_p9 = scmp.lt.s32.totalorder %s22_s18, %s22_s18 }
  0x18   :  { %p138_p8 = scmp.ne.s32.totalorder %s22_s18, %s137_s25  ;;  %p143_p10 = scmp.lt.s32.totalorder %s137_s25, %s137_s25 }
  0x1a   :  { %p144_p11 = por %p143_p10, %p142_p9 }
  0x1c   :  { %p145_p12 = pnand %p144_p11, %p138_p8 }
  0x1e   :  { %148 = shalt.err (!%p145_p12)
}
  0x1f   :  { %s179_s26 = smov 128   ;;  %s180_s27 = smov 8  }
  0x20   :  { %27 = dma.hbm_to_vmem [thread:$0]  %s242_s1, 256, %s22_s18, [#allocation5], %s179_s26, %s179_s26, %s180_s27  }
  0x21   :  { %173 = dma.done.wait [#allocation5], 256  }
  0x22   :  { %174 = vsyncadd [#allocation5], 4294967040  ;;  %v34_v0 = vlaneseq  ;;  %s64_s30 = sld [smem:[#allocation3]]  ;;  %v108_v6 = vld [vmem:[%s243_s2 + $0x1] ss:$0 sm:$0xff]  ;;  %s181_s8 = smov [#allocation7]  }
  0x23   :  { %v109_v7 = vld [vmem:[%s243_s2] ss:$0 sm:$0xff]  ;;  %s96_s1 = sshll.u32 %s181_s8, 4  ;;  %v85_v9 = vld [vmem:[#allocation4 + $0x8] sm:$0xff]  ;;  %vm88_vm2 = vcmask 261120   ;;  %s97_s1 = int_to_ptr.vmem [resolvable:$true] %s96_s1 }
  0x24   :  { %v35_v1 = vshrl.u32 %v34_v0, 7  ;;  %v84_v8 = vld [vmem:[#allocation4] sm:$0xff]  ;;  %s149_s9 = scalar_lea.vmem %s97_s1, 256  ;;  %p154_p0 = scmp.lt.s32.totalorder %s97_s1, %s97_s1 }
  0x25   :  { %p150_p13 = scmp.ne.s32.totalorder %s97_s1, %s149_s9  ;;  %p155_p1 = scmp.lt.s32.totalorder %s149_s9, %s149_s9 }
  0x26   :  { %v44_v2 = vand.u32 7, %v35_v1  ;;  %v36_v3 = vadd.s32 8, %v35_v1 }
  0x27   :  { %p156_p2 = por %p155_p1, %p154_p0 }
  0x28   :  { %v51_v4 = vand.u32 7, %v36_v3  ;;  %v65_v5 = vstv %s64_s30 }
  0x29   :  { %vm66_vm0 = vcmp.lt.s32.totalorder %v44_v2, %v65_v5  ;;  %p157_p3 = pnand %p156_p2, %p150_p13 }
  0x2a   :  { %vm67_vm1 = vcmp.lt.s32.totalorder %v51_v4, %v65_v5  ;;  %v82_v10 = vsel %vm66_vm0, %v108_v6, %v109_v7 }
  0x2b   :  { %v83_v11 = vsel %vm67_vm1, %v108_v6, %v109_v7  ;;  %v86_v12 = vadd.f32 %v84_v8, %v82_v10 }
  0x2c   :  { %v87_v13 = vadd.f32 %v85_v9, %v83_v11 }
  0x2d   :  { %89 = vst.msk [vmem:[#allocation7] sm:$0xff] %vm88_vm2, %v86_v12 }
  0x2e   :  { %90 = vst.msk [vmem:[#allocation7 + $0x8] sm:$0xff] %vm88_vm2, %v87_v13 }
  0x2f   :  { %160 = shalt.err (!%p157_p3)
}
  0x30   :  { %s161_s11 = scalar_lea.hbm %s244_s3, 256 }
  0x31   :  { %p162_p4 = scmp.ne.s32.totalorder %s244_s3, %s161_s11  ;;  %p165_p5 = scmp.lt.u32.totalorder %s161_s11, %s244_s3 }
  0x33   :  { %p167_p6 = pnand %p165_p5, %p162_p4 }
  0x35   :  { %170 = shalt.err (!%p167_p6)
}
  0x36   :  { %102 = dma.vmem_to_hbm [thread:$0]  %s97_s1, 256, %s244_s3, [#allocation6], %s179_s26, %s179_s26, %s180_s27  }
  0x37   :  { %175 = dma.done.wait [#allocation6], 256  }
  0x38   :  { %176 = vsyncadd [#allocation6], 4294967040 }
  0x39   :  { %106 = vsyncpa [#allocation5], 1 }
  0x3a   :  { %107 = vsyncpa [#allocation6], 1 }

</bundles_post_ra>
